<compile_context>
chip_gen: v6e
topology: v6e:2x2x1
jax: 0.10.0
libtpu: 0.0.40
codegen_flags: <defaults>
</compile_context>

<pallas_src>
import jax
import jax.numpy as jnp
from jax import lax
from jax.experimental import pallas as pl
from jax.experimental.pallas import tpu as pltpu

EPS = 1e-8
LANE = 128
SUBLANE = 8


def _row_granule(*dtypes):
    """Sublane granularity (second-to-minor block dim) covering all dtypes."""
    g = SUBLANE
    for dt in dtypes:
        item = jnp.dtype(dt).itemsize
        g = max(g, {4: 8, 2: 16, 1: 32}.get(item, SUBLANE))
    return g


def _make_kernel(rows, tile_rows, blocks_per_core, needs_mask):
    def kernel(x_ref, y_ref, w_ref, o_ref):
        c = pl.program_id(0)
        i = pl.program_id(1)

        @pl.when(i == 0)
        def _():
            o_ref[...] = jnp.zeros_like(o_ref)

        # Load native dtype (bf16 streams at 2 B/elem), do the math in f32.
        x = x_ref[...].astype(jnp.float32)
        y = y_ref[...].astype(jnp.float32)
        w = w_ref[...].astype(jnp.float32)

        entropy = -y * jnp.log(x + EPS) - (1.0 - y) * jnp.log(1.0 - x + EPS)
        ew = entropy * w

        if needs_mask:
            # Zero rows past the end of the real array (ragged last block and
            # clamped phantom blocks).  Use where (select), NOT multiply, so
            # NaN/Inf from unspecified padded reads cannot leak into the sum.
            start = (c * blocks_per_core + i) * tile_rows
            row_ids = start + lax.broadcasted_iota(jnp.int32, ew.shape, 0)
            ew = jnp.where(row_ids < rows, ew, 0.0)

        # Pure VPU accumulation into the resident (8,128) output block; the
        # only cross-lane (XLU) reduction happens once, in the wrapper.
        o_ref[...] += jnp.sum(ew.reshape(-1, SUBLANE, LANE), axis=0)

    return kernel


def _weighted_entropy_partials(x2, y2, w2, tile_rows, num_cores):
    """x2/y2/w2: [rows, 128]. Returns (num_cores, 8, 128) f32 partial sums."""
    rows = x2.shape[0]
    nb = pl.cdiv(rows, tile_rows)               # total row-blocks
    num_cores = max(1, min(num_cores, nb))      # never more cores than blocks
    bpc = pl.cdiv(nb, num_cores)                # blocks per core
    needs_mask = (rows % tile_rows != 0) or (num_cores * bpc != nb)

    def in_map(c, i):
        # Clamp phantom trailing blocks (when nb % num_cores != 0) onto the
        # last valid block; their contribution is zeroed by the row mask.
        return (jnp.minimum(c * bpc + i, nb - 1), 0)

    in_spec = pl.BlockSpec((tile_rows, LANE), in_map)

    return pl.pallas_call(
        _make_kernel(rows, tile_rows, bpc, needs_mask),
        out_shape=jax.ShapeDtypeStruct((num_cores, SUBLANE, LANE), jnp.float32),
        grid_spec=pltpu.PrefetchScalarGridSpec(
            num_scalar_prefetch=0,
            grid=(num_cores, bpc),
            in_specs=[in_spec, in_spec, in_spec],
            out_specs=pl.BlockSpec((None, SUBLANE, LANE), lambda c, i: (c, 0, 0)),
        ),
        compiler_params=pltpu.CompilerParams(
            dimension_semantics=("parallel", "arbitrary")),
    )(x2, y2, w2)


def myloss(input_, label, weight, *, tile_rows=4096, num_cores=2):
    """Weighted BCE summed over all elements, divided by 2 (PyTorch Myloss)."""
    assert input_.shape == label.shape == weight.shape
    n = input_.size

    x = input_.reshape(-1)
    y = label.reshape(-1)
    w = weight.reshape(-1)

    granule = _row_granule(x.dtype, y.dtype, w.dtype)
    tile_rows = max(granule, (tile_rows // granule) * granule)

    rows = n // LANE
    total = jnp.float32(0.0)
    rem_start = 0

    if rows >= granule:
        n_main = rows * LANE
        # Cap the block so it never exceeds the (rounded-up) array extent.
        t_rows = min(tile_rows, -(-rows // granule) * granule)
        if n_main == n:
            # Free reshape: no copy of the bulk data.
            xm = x.reshape(rows, LANE)
            ym = y.reshape(rows, LANE)
            wm = w.reshape(rows, LANE)
        else:
            # Only when n % 128 != 0 does a prefix slice (copy) happen.
            xm = x[:n_main].reshape(rows, LANE)
            ym = y[:n_main].reshape(rows, LANE)
            wm = w[:n_main].reshape(rows, LANE)
        partials = _weighted_entropy_partials(xm, ym, wm, t_rows, num_cores)
        total = total + jnp.sum(partials)
        rem_start = n_main

    if rem_start < n:
        # Tiny remainder (< 128 elements, or whole array if it is tiny).
        xr = x[rem_start:].astype(jnp.float32)
        yr = y[rem_start:].astype(jnp.float32)
        wr = w[rem_start:].astype(jnp.float32)
        ent = -yr * jnp.log(xr + EPS) - (1.0 - yr) * jnp.log(1.0 - xr + EPS)
        total = total + jnp.sum(ent * wr)

    return total * 0.5


def myloss_ref(input_, label, weight):
    x = input_.astype(jnp.float32)
    y = label.astype(jnp.float32)
    w = weight.astype(jnp.float32)
    entropy = -y * jnp.log(x + EPS) - (1.0 - y) * jnp.log(1.0 - x + EPS)
    return jnp.sum(entropy * w) / 2.0


if __name__ == "__main__":
    key = jax.random.PRNGKey(0)
    k1, k2, k3 = jax.random.split(key, 3)

    # Main test: module-consistent small shape (batch=2, channels=4, 16x16).
    shape = (2, 4, 16, 16)
    input_ = jax.random.uniform(k1, shape, jnp.float32, 0.01, 0.99)
    label = (jax.random.uniform(k2, shape) > 0.5).astype(jnp.float32)
    weight = jax.random.uniform(k3, shape, jnp.float32, 0.1, 2.0)

    ref = myloss_ref(input_, label, weight)
    out = jax.block_until_ready(myloss(input_, label, weight))
    assert jnp.allclose(out, ref, rtol=1e-5, atol=1e-5), (out, ref)

    # Ragged / multi-block / 2-core path: odd length exercises the masked last
    # block, the clamped phantom block and the <128-element jnp remainder.
    n2 = 130 * LANE + 37
    j1, j2, j3 = jax.random.split(jax.random.PRNGKey(0), 3)
    xi = jax.random.uniform(j1, (n2,), jnp.float32, 0.01, 0.99)
    yi = (jax.random.uniform(j2, (n2,)) > 0.5).astype(jnp.float32)
    wi = jax.random.uniform(j3, (n2,), jnp.float32, 0.1, 2.0)
    ref2 = myloss_ref(xi, yi, wi)
    out2 = jax.block_until_ready(myloss(xi, yi, wi, tile_rows=32))
    assert jnp.allclose(out2, ref2, rtol=1e-5, atol=1e-5), (out2, ref2)

    # Native bf16 input streams at 2 B/elem; math/accumulation stays f32.
    x_bf16 = input_.astype(jnp.bfloat16)
    ref3 = myloss_ref(x_bf16, label, weight)
    out3 = jax.block_until_ready(myloss(x_bf16, label, weight))
    assert jnp.allclose(out3, ref3, rtol=1e-5, atol=1e-5), (out3, ref3)

    print("KERNEL_OK")
</pallas_src>

<mosaic_0001>
module attributes {stable_mosaic.version = 11 : i64} {
  func.func @kernel(%arg0: i32, %arg1: i32, %arg2: memref<16x128xf32, #tpu.memory_space<vmem>>, %arg3: memref<16x128xf32, #tpu.memory_space<vmem>>, %arg4: memref<16x128xf32, #tpu.memory_space<vmem>>, %arg5: memref<1x8x128xf32, #tpu.memory_space<vmem>>) attributes {dimension_semantics = [#tpu.dimension_semantics<parallel>, #tpu.dimension_semantics<arbitrary>], iteration_bounds = array<i64: 1, 1>, scalar_prefetch = 0 : i64, scratch_operands = 0 : i64, tpu.core_type = #tpu.core_type<tc>, window_params = [{transform_indices = @transform_0, window_bounds = array<i64: 16, 128>}, {transform_indices = @transform_1, window_bounds = array<i64: 16, 128>}, {transform_indices = @transform_2, window_bounds = array<i64: 16, 128>}, {transform_indices = @transform_3, window_bounds = array<i64: 1, 8, 128>}]} {
    %c0_i32 = arith.constant 0 : i32
    %0 = arith.cmpi eq, %arg1, %c0_i32 : i32
    %1 = arith.extui %0 : i1 to i32
    %c0_i32_0 = arith.constant 0 : i32
    %2 = arith.cmpi ne, %1, %c0_i32_0 : i32
    scf.if %2 {
      %cst_17 = arith.constant 0.000000e+00 : f32
      %30 = vector.broadcast %cst_17 : f32 to vector<8x128xf32>
      %c0_18 = arith.constant 0 : index
      %c0_19 = arith.constant 0 : index
      %c0_20 = arith.constant 0 : index
      %31 = vector.load %arg5[%c0_18, %c0_19, %c0_20] : memref<1x8x128xf32, #tpu.memory_space<vmem>>, vector<1x8x128xf32>
      %32 = vector.shape_cast %31 : vector<1x8x128xf32> to vector<8x128xf32>
      %33 = vector.shape_cast %30 : vector<8x128xf32> to vector<1x8x128xf32>
      tpu.vector_store %arg5[%c0_18, %c0_19, %c0_20], %33 {strides = array<i32>} : memref<1x8x128xf32, #tpu.memory_space<vmem>>, vector<1x8x128xf32>,
    } else {
    }
    %c0 = arith.constant 0 : index
    %c0_1 = arith.constant 0 : index
    %3 = vector.load %arg2[%c0, %c0_1] : memref<16x128xf32, #tpu.memory_space<vmem>>, vector<16x128xf32>
    %c0_2 = arith.constant 0 : index
    %c0_3 = arith.constant 0 : index
    %4 = vector.load %arg3[%c0_2, %c0_3] : memref<16x128xf32, #tpu.memory_space<vmem>>, vector<16x128xf32>
    %c0_4 = arith.constant 0 : index
    %c0_5 = arith.constant 0 : index
    %5 = vector.load %arg4[%c0_4, %c0_5] : memref<16x128xf32, #tpu.memory_space<vmem>>, vector<16x128xf32>
    %cst = arith.constant 0.000000e+00 : f32
    %6 = vector.broadcast %cst : f32 to vector<16x128xf32>
    %7 = arith.subf %6, %4 : vector<16x128xf32>
    %cst_6 = arith.constant 9.99999993E-9 : f32
    %8 = vector.broadcast %cst_6 : f32 to vector<16x128xf32>
    %9 = arith.addf %3, %8 : vector<16x128xf32>
    %10 = math.log %9 : vector<16x128xf32>
    %11 = arith.mulf %7, %10 : vector<16x128xf32>
    %cst_7 = arith.constant 1.000000e+00 : f32
    %12 = vector.broadcast %cst_7 : f32 to vector<16x128xf32>
    %13 = arith.subf %12, %4 : vector<16x128xf32>
    %cst_8 = arith.constant 1.000000e+00 : f32
    %14 = vector.broadcast %cst_8 : f32 to vector<16x128xf32>
    %15 = arith.subf %14, %3 : vector<16x128xf32>
    %cst_9 = arith.constant 9.99999993E-9 : f32
    %16 = vector.broadcast %cst_9 : f32 to vector<16x128xf32>
    %17 = arith.addf %15, %16 : vector<16x128xf32>
    %18 = math.log %17 : vector<16x128xf32>
    %19 = arith.mulf %13, %18 : vector<16x128xf32>
    %20 = arith.subf %11, %19 : vector<16x128xf32>
    %21 = arith.mulf %20, %5 : vector<16x128xf32>
    %c0_10 = arith.constant 0 : index
    %c0_11 = arith.constant 0 : index
    %c0_12 = arith.constant 0 : index
    %22 = vector.load %arg5[%c0_10, %c0_11, %c0_12] : memref<1x8x128xf32, #tpu.memory_space<vmem>>, vector<1x8x128xf32>
    %23 = vector.shape_cast %22 : vector<1x8x128xf32> to vector<8x128xf32>
    %24 = vector.shape_cast %21 : vector<16x128xf32> to vector<2x8x128xf32>
    %cst_13 = arith.constant dense<0.000000e+00> : vector<8x128xf32>
    %25 = vector.multi_reduction <add>, %24, %cst_13 [0] : vector<2x8x128xf32> to vector<8x128xf32>
    %26 = arith.addf %23, %25 : vector<8x128xf32>
    %c0_14 = arith.constant 0 : index
    %c0_15 = arith.constant 0 : index
    %c0_16 = arith.constant 0 : index
    %27 = vector.load %arg5[%c0_14, %c0_15, %c0_16] : memref<1x8x128xf32, #tpu.memory_space<vmem>>, vector<1x8x128xf32>
    %28 = vector.shape_cast %27 : vector<1x8x128xf32> to vector<8x128xf32>
    %29 = vector.shape_cast %26 : vector<8x128xf32> to vector<1x8x128xf32>
    tpu.vector_store %arg5[%c0_14, %c0_15, %c0_16], %29 {strides = array<i32>} : memref<1x8x128xf32, #tpu.memory_space<vmem>>, vector<1x8x128xf32>,
    return
  }
  func.func @transform_0(%arg0: i32, %arg1: i32) -> (i32, i32) {
    %c1_i32 = arith.constant 1 : i32
    %0 = arith.muli %arg0, %c1_i32 : i32
    %1 = arith.addi %0, %arg1 : i32
    %c0_i32 = arith.constant 0 : i32
    %2 = arith.minsi %1, %c0_i32 : i32
    %c0_i32_0 = arith.constant 0 : i32
    %c0_i32_1 = arith.constant 0 : i32
    return %2, %c0_i32_0 : i32, i32
  }
  func.func @transform_1(%arg0: i32, %arg1: i32) -> (i32, i32) {
    %c1_i32 = arith.constant 1 : i32
    %0 = arith.muli %arg0, %c1_i32 : i32
    %1 = arith.addi %0, %arg1 : i32
    %c0_i32 = arith.constant 0 : i32
    %2 = arith.minsi %1, %c0_i32 : i32
    %c0_i32_0 = arith.constant 0 : i32
    %c0_i32_1 = arith.constant 0 : i32
    return %2, %c0_i32_0 : i32, i32
  }
  func.func @transform_2(%arg0: i32, %arg1: i32) -> (i32, i32) {
    %c1_i32 = arith.constant 1 : i32
    %0 = arith.muli %arg0, %c1_i32 : i32
    %1 = arith.addi %0, %arg1 : i32
    %c0_i32 = arith.constant 0 : i32
    %2 = arith.minsi %1, %c0_i32 : i32
    %c0_i32_0 = arith.constant 0 : i32
    %c0_i32_1 = arith.constant 0 : i32
    return %2, %c0_i32_0 : i32, i32
  }
  func.func @transform_3(%arg0: i32, %arg1: i32) -> (i32, i32, i32) {
    %c0_i32 = arith.constant 0 : i32
    %c0_i32_0 = arith.constant 0 : i32
    %c0_i32_1 = arith.constant 0 : i32
    return %arg0, %c0_i32, %c0_i32_0 : i32, i32, i32
  }
}

</mosaic_0001>

<bundles_post_ra>
// kernel: tpu_custom_call.1
= control target key start
LH: loop header
LB: loop body
LE: loop exit
PB: predicated region body
PF: predicated region fallthrough
CT: control target
= control target key end

     0   :  { %8 = vsyncpa [#allocation3], 0  ;;  %s288_s0 = inlined_call_operand.hbm [shape: f32[16,128], index: 0, kind: input, shape index: {}]   ;;  %s289_s1 = inlined_call_operand.hbm [shape: f32[16,128], index: 1, kind: input, shape index: {}]   ;;  %s290_s2 = inlined_call_operand.hbm [shape: f32[16,128], index: 2, kind: input, shape index: {}]   ;;  %s291_s3 = inlined_call_operand.hbm [shape: f32[1,8,128], index: 3, kind: output, shape index: {}]  }
   0x1   :  { %9 = vsyncpa [#allocation6], 0 }
   0x2   :  { %10 = vsyncpa [#allocation4], 0  ;;  %s250_s12 = smov [#allocation5]   ;;  %s251_s14 = smov [#allocation2]  }
   0x3   :  { %s40_s13 = sshll.u32 %s250_s12, 4  ;;  %s22_s15 = sshll.u32 %s251_s14, 4  ;;  %s41_s13 = int_to_ptr.vmem [resolvable:$true] %s40_s13  ;;  %s23_s15 = int_to_ptr.vmem [resolvable:$true] %s22_s15 }
   0x4   :  { %s172_s16 = scalar_lea.vmem %s41_s13, 256  ;;  %p177_p1 = scmp.lt.s32.totalorder %s41_s13, %s41_s13 }
   0x5   :  { %p173_p0 = scmp.ne.s32.totalorder %s41_s13, %s172_s16  ;;  %p178_p2 = scmp.lt.s32.totalorder %s172_s16, %s172_s16 }
   0x7   :  { %p179_p3 = por %p178_p2, %p177_p1 }
   0x9   :  { %p180_p4 = pnand %p179_p3, %p173_p0 }
   0xb   :  { %183 = shalt.err (!%p180_p4)
}
   0xc   :  { %s252_s17 = smov 128   ;;  %s253_s18 = smov 8  }
   0xd   :  { %46 = dma.hbm_to_vmem [thread:$0]  %s289_s1, 256, %s41_s13, [#allocation6], %s252_s17, %s252_s17, %s253_s18  }
   0xe   :  { %s192_s21 = scalar_lea.vmem %s23_s15, 256  ;;  %p197_p6 = scmp.lt.s32.totalorder %s23_s15, %s23_s15 }
   0xf   :  { %p193_p5 = scmp.ne.s32.totalorder %s23_s15, %s192_s21  ;;  %p198_p7 = scmp.lt.s32.totalorder %s192_s21, %s192_s21 }
  0x11   :  { %p199_p8 = por %p198_p7, %p197_p6 }
  0x13   :  { %p200_p9 = pnand %p199_p8, %p193_p5 }
  0x15   :  { %203 = shalt.err (!%p200_p9)
}
  0x16   :  { %28 = dma.hbm_to_vmem [thread:$0]  %s288_s0, 256, %s23_s15, [#allocation3], %s252_s17, %s252_s17, %s253_s18  }
  0x17   :  { %s254_s24 = smov [#allocation7]  }
  0x18   :  { %s58_s25 = sshll.u32 %s254_s24, 4  ;;  %s59_s25 = int_to_ptr.vmem [resolvable:$true] %s58_s25 }
  0x19   :  { %s212_s26 = scalar_lea.vmem %s59_s25, 256  ;;  %p217_p11 = scmp.lt.s32.totalorder %s59_s25, %s59_s25 }
  0x1a   :  { %p213_p10 = scmp.ne.s32.totalorder %s59_s25, %s212_s26  ;;  %p218_p12 = scmp.lt.s32.totalorder %s212_s26, %s212_s26 }
  0x1c   :  { %p219_p13 = por %p218_p12, %p217_p11 }
  0x1e   :  { %p220_p0 = pnand %p219_p13, %p213_p10 }
  0x20   :  { %223 = shalt.err (!%p220_p0)
}
  0x21   :  { %64 = dma.hbm_to_vmem [thread:$0]  %s290_s2, 256, %s59_s25, [#allocation6], %s252_s17, %s252_s17, %s253_s18  }
  0x22   :  { %244 = dma.done.wait [#allocation3], 256  }
  0x23   :  { %245 = vsyncadd [#allocation3], 4294967040 }
  0x24   :  { %246 = dma.done.wait [#allocation6], 512  }
  0x25   :  { %247 = vsyncadd [#allocation6], 4294966784  ;;  %v91_v0 = vld [vmem:[#allocation2] sm:$0xff]  ;;  %v92_v1 = vld [vmem:[#allocation2 + $0x8] sm:$0xff]  ;;  %s255_s0 = smov [#allocation8]  }
  0x26   :  { %v99_v2 = vadd.f32 1e-08, %v91_v0  ;;  %v100_v3 = vadd.f32 1e-08, %v92_v1  ;;  %v109_v4 = vsub.f32 1.0, %v91_v0  ;;  %v110_v5 = vsub.f32 1.0, %v92_v1 }
  0x27   :  { %v93_v8 = vld [vmem:[#allocation5] sm:$0xff]  ;;  %v94_v9 = vld [vmem:[#allocation5 + $0x8] sm:$0xff]  ;;  %v95_v25 = vld [vmem:[#allocation7] sm:$0xff]  ;;  %s133_s2 = sshll.u32 %s255_s0, 4  ;;  %s134_s2 = int_to_ptr.vmem [resolvable:$true] %s133_s2 }
  0x28   :  { %156 = vlog2.f32 %v99_v2  ;;  %v111_v6 = vadd.f32 1e-08, %v109_v4  ;;  %v112_v7 = vadd.f32 1e-08, %v110_v5  ;;  %v97_v12 = vsub.f32 0.0, %v93_v8  ;;  %v96_v27 = vld [vmem:[#allocation7 + $0x8] sm:$0xff]  ;;  %p229_p2 = scmp.lt.s32.totalorder %s134_s2, %s134_s2 }
  0x29   :  { %158 = vlog2.f32 %v100_v3  ;;  %v98_v14 = vsub.f32 0.0, %v94_v9  ;;  %v107_v16 = vsub.f32 1.0, %v93_v8  ;;  %v108_v18 = vsub.f32 1.0, %v94_v9  ;;  %s224_s28 = scalar_lea.vmem %s134_s2, 128 }
  0x2a   :  { %160 = vlog2.f32 %v111_v6  ;;  %p225_p1 = scmp.ne.s32.totalorder %s134_s2, %s224_s28  ;;  %p230_p3 = scmp.lt.s32.totalorder %s224_s28, %s224_s28 }
  0x2b   :  { %162 = vlog2.f32 %v112_v7 }
  0x2c   :  { %p231_p4 = por %p230_p3, %p229_p2 }
  0x2e   :  { %p232_p5 = pnand %p231_p4, %p225_p1 }
  0x35   :  { %v157_v10 = vpop.eup %156 }
  0x36   :  { %v159_v11 = vpop.eup %158  ;;  %v102_v13 = vmul.f32 0.6931472, %v157_v10 }
  0x37   :  { %v104_v15 = vmul.f32 0.6931472, %v159_v11  ;;  %v161_v17 = vpop.eup %160 }
  0x38   :  { %v163_v19 = vpop.eup %162  ;;  %v105_v20 = vmul.f32 %v102_v13, %v97_v12  ;;  %v114_v21 = vmul.f32 0.6931472, %v161_v17 }
  0x39   :  { %v106_v22 = vmul.f32 %v104_v15, %v98_v14  ;;  %v116_v23 = vmul.f32 0.6931472, %v163_v19 }
  0x3a   :  { %v117_v24 = vmul.f32 %v114_v21, %v107_v16 }
  0x3b   :  { %v118_v26 = vmul.f32 %v116_v23, %v108_v18 }
  0x3c   :  { %v119_v28 = vsub.f32 %v105_v20, %v117_v24 }
  0x3d   :  { %v120_v29 = vsub.f32 %v106_v22, %v118_v26 }
  0x3e   :  { %v121_v30 = vmul.f32 %v119_v28, %v95_v25 }
  0x3f   :  { %v122_v31 = vmul.f32 %v120_v29, %v96_v27 }
  0x41   :  { %v124_v32 = vadd.f32 %v122_v31, %v121_v30 }
  0x43   :  { %126 = vst [vmem:[#allocation8] sm:$0xff] %v124_v32 }
  0x44   :  { %235 = shalt.err (!%p232_p5)
}
  0x45   :  { %136 = dma.vmem_to_hbm [thread:$0]  %s134_s2, 128, %s291_s3, [#allocation4]  }
  0x46   :  { %248 = dma.done.wait [#allocation4], 128  }
  0x47   :  { %249 = vsyncadd [#allocation4], 4294967168 }
  0x48   :  { %140 = vsyncpa [#allocation3], 1 }
  0x49   :  { %141 = vsyncpa [#allocation6], 1 }
  0x4a   :  { %142 = vsyncpa [#allocation4], 1 }

</bundles_post_ra>
